<compile_context>
chip_gen: v6e
topology: v6e:2x2x1
jax: 0.10.0
libtpu: 0.0.40
codegen_flags: <defaults>
</compile_context>

<pallas_src>
import math
import functools

import numpy as np
import jax
import jax.numpy as jnp
from jax.experimental import pallas as pl
from jax.experimental.pallas import tpu as pltpu

NODE_DIM = 128
HIDDEN_DIM = 64
ACTION_BLOCKS = 2
MAX_Z = 20            # synthetic element-table size
SUBLANE = 8
MAX_TILE = 1024       # atom rows per tile: (1024,128) f32 = 0.5 MiB per buffer
NEG_INF = -1e30       # finite "-inf": padded rows / empty tiles never give NaN

# Deterministic stand-ins for get_default_unit() / unit_conversion() constants.
LEN_UNIT_CONV = 1.0
PROP_UNIT_CONV = 1.0
GRAD_UNIT_CONV = 1.0


# ---------------------------------------------------------------------------
# Fused Pallas kernel: ACTION_BLOCKS x (charge+spin JitEleEmbedding) + out_mlp
# ---------------------------------------------------------------------------
def _fused_painn_kernel(x_ref, wqk_ref, bqk_ref, v_ref, w1_ref, b1_ref, w2_ref,
                        e_ref, m_sc, s_sc, hsum_sc, *, n_real, tile, n_blocks):
    # grid = (n_blocks + 1, n_tiles)
    #   phase p < n_blocks : accumulate global softmax stats of block p
    #   phase p == n_blocks: apply last block + out_mlp energy accumulation
    p = pl.program_id(0)
    t = pl.program_id(1)

    rows = t * tile + jax.lax.broadcasted_iota(jnp.int32, (tile, 1), 0)
    mask = (rows < n_real).astype(jnp.float32)                 # [tile, 1]

    def block_dot(x, blk):
        # attention logits of block `blk` for charge (lane 0) / spin (lane 1);
        # lanes 2..7 are zero padding of the folded RHS.
        d = jax.lax.dot_general(x, wqk_ref[blk], (((1,), (1,)), ((), ())),
                                preferred_element_type=jnp.float32)   # [tile, 8]
        d = d + bqk_ref[blk]
        return jnp.where(mask > 0.0, d, NEG_INF)

    def replay(n_apply):
        # Reconstruct x after blocks 0..n_apply-1 from the read-only original
        # x tile, using the already-finalized global softmax statistics.
        x = x_ref[...]
        for l in range(n_apply):
            d = block_dot(x, l)
            inv_s = jnp.where(s_sc[l] > 0.0, 1.0 / s_sc[l], 0.0)       # [1, 8]
            attn = mask * jnp.exp(d - m_sc[l]) * inv_s                 # [tile, 8]
            # rows 0/1 of v_ref[l] are v_charge / v_spin, rows 2..7 are zero
            x = x + jnp.dot(attn, v_ref[l], preferred_element_type=jnp.float32)
        return x

    def phase_body(phase):
        x = replay(phase)
        if phase < n_blocks:
            # online (running max / running sum-of-exp) softmax over all atoms
            @pl.when(t == 0)
            def _init():
                m_sc[phase] = jnp.full((1, SUBLANE), NEG_INF, jnp.float32)
                s_sc[phase] = jnp.zeros((1, SUBLANE), jnp.float32)

            d = block_dot(x, phase)
            tile_max = jnp.max(d, axis=0, keepdims=True)               # [1, 8]
            m_old = m_sc[phase]
            m_new = jnp.maximum(m_old, tile_max)
            ex = jnp.exp(d - m_new) * mask
            s_sc[phase] = (s_sc[phase] * jnp.exp(m_old - m_new)
                           + jnp.sum(ex, axis=0, keepdims=True))
            m_sc[phase] = m_new
        else:
            # out_mlp: SiLU hidden, reduce over atoms BEFORE the 64->1 matmul
            @pl.when(t == 0)
            def _init():
                hsum_sc[...] = jnp.zeros(hsum_sc.shape, jnp.float32)

            h = jnp.dot(x, w1_ref[...], preferred_element_type=jnp.float32) + b1_ref[...]
            h = h * jax.nn.sigmoid(h)                                  # SiLU
            hsum_sc[...] += jnp.sum(h * mask, axis=0, keepdims=True)   # [1, H]
            e_ref[...] = jnp.dot(hsum_sc[...], w2_ref[...],
                                 preferred_element_type=jnp.float32)   # [1, 1]

    for phase in range(n_blocks + 1):
        pl.when(p == phase)(functools.partial(phase_body, phase))


def _choose_tiling(n_real):
    n8 = max(SUBLANE, SUBLANE * ((n_real + SUBLANE - 1) // SUBLANE))
    if n8 <= MAX_TILE:
        return n8, n8
    n_pad = MAX_TILE * ((n_real + MAX_TILE - 1) // MAX_TILE)
    return MAX_TILE, n_pad


def fused_painn_energy(x_pad, wqk_all, bqk_all, v_all, w1, b1, w2, *, n_real, tile):
    n_pad, d = x_pad.shape
    nb = wqk_all.shape[0]
    n_tiles = n_pad // tile
    kern = functools.partial(_fused_painn_kernel,
                             n_real=n_real, tile=tile, n_blocks=nb)
    return pl.pallas_call(
        kern,
        out_shape=jax.ShapeDtypeStruct((1, 1), jnp.float32),
        grid_spec=pltpu.PrefetchScalarGridSpec(
            num_scalar_prefetch=0,
            grid=(nb + 1, n_tiles),
            in_specs=[
                pl.BlockSpec((tile, d), lambda p, t: (t, 0)),             # x (read-only)
                pl.BlockSpec((nb, SUBLANE, d), lambda p, t: (0, 0, 0)),   # folded Wq^T k / sqrt(D)
                pl.BlockSpec((nb, 1, SUBLANE), lambda p, t: (0, 0, 0)),   # folded bq.k / sqrt(D)
                pl.BlockSpec((nb, SUBLANE, d), lambda p, t: (0, 0, 0)),   # v vectors
                pl.BlockSpec((d, HIDDEN_DIM), lambda p, t: (0, 0)),       # out_mlp w1
                pl.BlockSpec((1, HIDDEN_DIM), lambda p, t: (0, 0)),       # out_mlp b1
                pl.BlockSpec((HIDDEN_DIM, 1), lambda p, t: (0, 0)),       # out_mlp w2
            ],
            out_specs=pl.BlockSpec((1, 1), lambda p, t: (0, 0)),
            scratch_shapes=[
                pltpu.VMEM((nb, 1, SUBLANE), jnp.float32),   # running max per block
                pltpu.VMEM((nb, 1, SUBLANE), jnp.float32),   # running sum-of-exp per block
                pltpu.VMEM((1, HIDDEN_DIM), jnp.float32),    # masked hidden accumulator
            ],
        ),
        # Both axes carry sequential dependencies (phase ordering; online
        # softmax / energy accumulation across tiles) -> "arbitrary".
        # TODO(synk): splitting atom tiles over v7x's 2 TensorCores would need a
        # per-core partial-stats pass + combine; not implemented here.
        compiler_params=pltpu.CompilerParams(
            dimension_semantics=("arbitrary", "arbitrary"),
        ),
    )(x_pad, wqk_all, bqk_all, v_all, w1, b1, w2)


# ---------------------------------------------------------------------------
# Parameter construction (deterministic, PyTorch-default-style uniform init)
# ---------------------------------------------------------------------------
def _linear_w(key, fan_in, shape):
    lim = 1.0 / math.sqrt(fan_in)
    return jax.random.uniform(key, shape, jnp.float32, -lim, lim)


def init_params(key):
    n_keys = 5 + 6 * ACTION_BLOCKS
    keys = iter(jax.random.split(key, n_keys))
    params = {}
    # stand-in for the scalar (at_no) branch of XEmbedding
    params["embed_table"] = jax.random.normal(next(keys), (MAX_Z, NODE_DIM), jnp.float32)
    params["atom_sp"] = jnp.linspace(-1.0, 1.0, MAX_Z, dtype=jnp.float32)
    # JitGradOut.out_mlp (weights stored as [in, out] = W^T)
    params["out_w1"] = _linear_w(next(keys), NODE_DIM, (NODE_DIM, HIDDEN_DIM))
    params["out_b1"] = _linear_w(next(keys), NODE_DIM, (1, HIDDEN_DIM))
    params["out_w2"] = _linear_w(next(keys), HIDDEN_DIM, (HIDDEN_DIM, 1))
    params["out_b2"] = _linear_w(next(keys), HIDDEN_DIM, (1, 1))

    def ele_block(kq, kk, kv):
        return {
            "wq": _linear_w(kq, NODE_DIM, (NODE_DIM, NODE_DIM)),   # q_linear weight (transposed)
            "bq": jnp.zeros((1, NODE_DIM), jnp.float32),           # nn.init.zeros_
            "wk": _linear_w(kk, 1, (NODE_DIM,)),                   # k_linear weight column
            "bk": jnp.zeros((NODE_DIM,), jnp.float32),             # nn.init.zeros_
            "wv": _linear_w(kv, 1, (NODE_DIM,)),                   # v_linear (bias=False)
        }

    params["charge_ebd"] = [ele_block(next(keys), next(keys), next(keys))
                            for _ in range(ACTION_BLOCKS)]
    params["spin_ebd"] = [ele_block(next(keys), next(keys), next(keys))
                          for _ in range(ACTION_BLOCKS)]
    return params


def _fold_ele_params(params, charge, spin):
    """Fold q_linear/k_linear of every JitEleEmbedding into a per-block
    [8,128] matvec RHS (+ scalar), and stack the per-block v vectors.
    Row 0 = charge, row 1 = spin, rows 2..7 = zero padding."""
    hi = jax.lax.Precision.HIGHEST
    sqrt_dim = math.sqrt(NODE_DIM)
    wqk_blocks, bqk_blocks, v_blocks = [], [], []
    pad_rows = jnp.zeros((SUBLANE - 2, NODE_DIM), jnp.float32)
    pad_lane = jnp.zeros((SUBLANE - 2,), jnp.float32)
    for blk in range(ACTION_BLOCKS):
        w_rows, b_vals, v_rows = [], [], []
        for ele, pb in ((charge, params["charge_ebd"][blk]),
                        (spin, params["spin_ebd"][blk])):
            k = ele * pb["wk"] + pb["bk"]                                # [D]
            w_rows.append(jnp.dot(pb["wq"], k, precision=hi) / sqrt_dim) # Wq^T k / sqrt(D)
            # bq.k is a constant shift (softmax-invariant); kept for exact parity.
            b_vals.append(jnp.dot(pb["bq"][0], k, precision=hi) / sqrt_dim)
            v_rows.append(ele * pb["wv"])                                # [D]
        wqk_blocks.append(jnp.concatenate([jnp.stack(w_rows), pad_rows], axis=0))
        v_blocks.append(jnp.concatenate([jnp.stack(v_rows), pad_rows], axis=0))
        bqk_blocks.append(jnp.concatenate([jnp.stack(b_vals), pad_lane]).reshape(1, SUBLANE))
    return jnp.stack(wqk_blocks), jnp.stack(bqk_blocks), jnp.stack(v_blocks)


# ---------------------------------------------------------------------------
# JitPaiNNEle.forward (reduced pipeline)
# ---------------------------------------------------------------------------
def jit_painn_ele_forward(params, at_no, coord, charge, spin):
    n_real = coord.shape[0]
    tile, n_pad = _choose_tiling(n_real)

    coord = coord * LEN_UNIT_CONV
    # TODO(synk): radius_graph and XEmbedding's rbf/fcut/rsh branches plus the
    # XPainnMessage / XPainnUpdate (x_vector) blocks are not in the provided
    # source; only the at_no -> scalar-embedding branch is reproduced here.
    x_scalar = params["embed_table"][at_no]                      # [N, D]
    x_scalar = jnp.pad(x_scalar, ((0, n_pad - n_real), (0, 0)))

    charge = jnp.asarray(charge, jnp.float32)
    spin = jnp.asarray(spin, jnp.float32)
    wqk_all, bqk_all, v_all = _fold_ele_params(params, charge, spin)

    e_kernel = fused_painn_energy(
        x_scalar, wqk_all, bqk_all, v_all,
        params["out_w1"], params["out_b1"], params["out_w2"],
        n_real=n_real, tile=tile)
    # b2 contributes once per real atom; added here with the static atom count.
    e_nn = e_kernel[0, 0] + n_real * params["out_b2"][0, 0]

    # TODO(synk): .double() conversions kept in float32 (no native f64 on TPU).
    energy = (e_nn + jnp.sum(params["atom_sp"][at_no])) * PROP_UNIT_CONV
    # In this reduced pipeline x_scalar has no coord dependence (coord only
    # enters through the missing message blocks), so d(energy)/d(coord) == 0.
    # TODO(synk): nontrivial nuclear gradient needs the message/update blocks.
    nuc_grad = jnp.zeros_like(coord) * GRAD_UNIT_CONV
    return {"energy": energy, "gradient": nuc_grad}


# ---------------------------------------------------------------------------
# Pure-JAX reference (for correctness check)
# ---------------------------------------------------------------------------
def _reference_energy(params, at_no, charge, spin):
    hi = jax.lax.Precision.HIGHEST
    x = params["embed_table"][at_no]
    charge = jnp.asarray(charge, jnp.float32)
    spin = jnp.asarray(spin, jnp.float32)
    for blk in range(ACTION_BLOCKS):
        upd = jnp.zeros_like(x)
        for ele, pb in ((charge, params["charge_ebd"][blk]),
                        (spin, params["spin_ebd"][blk])):
            k = (ele * pb["wk"] + pb["bk"]).reshape(1, NODE_DIM)
            v = (ele * pb["wv"]).reshape(1, NODE_DIM)
            q = jnp.dot(x, pb["wq"], precision=hi) + pb["bq"]
            dot = jnp.sum(q * k, axis=1, keepdims=True) / math.sqrt(NODE_DIM)
            attn = jax.nn.softmax(dot, axis=0)
            upd = upd + attn * v
        x = x + upd
    h = jnp.dot(x, params["out_w1"], precision=hi) + params["out_b1"]
    h = h * jax.nn.sigmoid(h)
    atom_out = jnp.dot(h, params["out_w2"], precision=hi) + params["out_b2"]
    return (jnp.sum(atom_out) + jnp.sum(params["atom_sp"][at_no])) * PROP_UNIT_CONV


if __name__ == "__main__":
    key = jax.random.PRNGKey(0)
    k_params, k_atno, k_coord = jax.random.split(key, 3)
    params = init_params(k_params)

    n_atoms = 16
    at_no = jax.random.randint(k_atno, (n_atoms,), 1, MAX_Z)
    coord = jax.random.normal(k_coord, (n_atoms, 3), jnp.float32) * 3.0
    charge, spin = 1, 2

    fwd = jax.jit(functools.partial(jit_painn_ele_forward, params))
    out = fwd(at_no, coord, jnp.float32(charge), jnp.float32(spin))
    jax.block_until_ready(out)

    assert out["energy"].shape == ()
    assert out["gradient"].shape == (n_atoms, 3)

    ref_e = _reference_energy(params, at_no, jnp.float32(charge), jnp.float32(spin))
    np.testing.assert_allclose(np.asarray(out["energy"]), np.asarray(ref_e),
                               rtol=5e-3, atol=5e-3)
    print("KERNEL_OK")
</pallas_src>

<mosaic_0001>
module attributes {stable_mosaic.version = 11 : i64} {
  func.func @_fused_painn_kernel(%arg0: i32, %arg1: i32, %arg2: memref<16x128xf32, #tpu.memory_space<vmem>>, %arg3: memref<2x8x128xf32, #tpu.memory_space<vmem>>, %arg4: memref<2x1x8xf32, #tpu.memory_space<vmem>>, %arg5: memref<2x8x128xf32, #tpu.memory_space<vmem>>, %arg6: memref<128x64xf32, #tpu.memory_space<vmem>>, %arg7: memref<1x64xf32, #tpu.memory_space<vmem>>, %arg8: memref<64x1xf32, #tpu.memory_space<vmem>>, %arg9: memref<1x1xf32, #tpu.memory_space<vmem>>, %arg10: memref<2x1x8xf32, #tpu.memory_space<vmem>>, %arg11: memref<2x1x8xf32, #tpu.memory_space<vmem>>, %arg12: memref<1x64xf32, #tpu.memory_space<vmem>>) attributes {dimension_semantics = [#tpu.dimension_semantics<arbitrary>, #tpu.dimension_semantics<arbitrary>], iteration_bounds = array<i64: 3, 1>, scalar_prefetch = 0 : i64, scratch_operands = 3 : i64, tpu.core_type = #tpu.core_type<tc>, window_params = [{transform_indices = @transform_0, window_bounds = array<i64: 16, 128>}, {pipeline_mode = #tpu.pipeline_mode<synchronous>, transform_indices = @transform_1, window_bounds = array<i64: 2, 8, 128>}, {pipeline_mode = #tpu.pipeline_mode<synchronous>, transform_indices = @transform_2, window_bounds = array<i64: 2, 1, 8>}, {pipeline_mode = #tpu.pipeline_mode<synchronous>, transform_indices = @transform_3, window_bounds = array<i64: 2, 8, 128>}, {pipeline_mode = #tpu.pipeline_mode<synchronous>, transform_indices = @transform_4, window_bounds = array<i64: 128, 64>}, {pipeline_mode = #tpu.pipeline_mode<synchronous>, transform_indices = @transform_5, window_bounds = array<i64: 1, 64>}, {pipeline_mode = #tpu.pipeline_mode<synchronous>, transform_indices = @transform_6, window_bounds = array<i64: 64, 1>}, {pipeline_mode = #tpu.pipeline_mode<synchronous>, transform_indices = @transform_7, window_bounds = array<i64: 1, 1>}]} {
    %c16_i32 = arith.constant 16 : i32
    %0 = arith.muli %arg1, %c16_i32 : i32
    %1 = tpu.iota {dimensions = array<i32: 0>} : vector<16x1xi32>
    %2 = vector.broadcast %0 : i32 to vector<16x1xi32>
    %3 = arith.addi %2, %1 : vector<16x1xi32>
    %c16_i32_0 = arith.constant 16 : i32
    %4 = vector.broadcast %c16_i32_0 : i32 to vector<16x1xi32>
    %5 = arith.cmpi slt, %3, %4 : vector<16x1xi32>
    %6 = arith.extui %5 : vector<16x1xi1> to vector<16x1xi32>
    %7 = arith.sitofp %6 : vector<16x1xi32> to vector<16x1xf32>
    %c0_i32 = arith.constant 0 : i32
    %8 = arith.cmpi eq, %arg0, %c0_i32 : i32
    %9 = arith.extui %8 : i1 to i32
    %c0_i32_1 = arith.constant 0 : i32
    %10 = arith.cmpi ne, %9, %c0_i32_1 : i32
    scf.if %10 {
      %c0 = arith.constant 0 : index
      %c0_4 = arith.constant 0 : index
      %17 = vector.load %arg2[%c0, %c0_4] : memref<16x128xf32, #tpu.memory_space<vmem>>, vector<16x128xf32>
      %c0_i32_5 = arith.constant 0 : i32
      %18 = arith.cmpi eq, %arg1, %c0_i32_5 : i32
      %19 = arith.extui %18 : i1 to i32
      %c0_i32_6 = arith.constant 0 : i32
      %20 = arith.cmpi ne, %19, %c0_i32_6 : i32
      scf.if %20 {
        %cst_29 = arith.constant -1.000000e+30 : f32
        %58 = vector.broadcast %cst_29 : f32 to vector<1x8xf32>
        %c0_30 = arith.constant 0 : index
        %c0_31 = arith.constant 0 : index
        %c0_32 = arith.constant 0 : index
        %59 = vector.load %arg10[%c0_30, %c0_31, %c0_32] : memref<2x1x8xf32, #tpu.memory_space<vmem>>, vector<1x1x8xf32>
        %60 = vector.shape_cast %59 : vector<1x1x8xf32> to vector<1x8xf32>
        %61 = vector.shape_cast %58 : vector<1x8xf32> to vector<1x1x8xf32>
        tpu.vector_store %arg10[%c0_30, %c0_31, %c0_32], %61 {strides = array<i32>} : memref<2x1x8xf32, #tpu.memory_space<vmem>>, vector<1x1x8xf32>,
        %cst_33 = arith.constant 0.000000e+00 : f32
        %62 = vector.broadcast %cst_33 : f32 to vector<1x8xf32>
        %c0_34 = arith.constant 0 : index
        %c0_35 = arith.constant 0 : index
        %c0_36 = arith.constant 0 : index
        %63 = vector.load %arg11[%c0_34, %c0_35, %c0_36] : memref<2x1x8xf32, #tpu.memory_space<vmem>>, vector<1x1x8xf32>
        %64 = vector.shape_cast %63 : vector<1x1x8xf32> to vector<1x8xf32>
        %65 = vector.shape_cast %62 : vector<1x8xf32> to vector<1x1x8xf32>
        tpu.vector_store %arg11[%c0_34, %c0_35, %c0_36], %65 {strides = array<i32>} : memref<2x1x8xf32, #tpu.memory_space<vmem>>, vector<1x1x8xf32>,
      } else {
      }
      %c0_7 = arith.constant 0 : index
      %c0_8 = arith.constant 0 : index
      %c0_9 = arith.constant 0 : index
      %21 = vector.load %arg3[%c0_7, %c0_8, %c0_9] : memref<2x8x128xf32, #tpu.memory_space<vmem>>, vector<1x8x128xf32>
      %22 = vector.shape_cast %21 : vector<1x8x128xf32> to vector<8x128xf32>
      %cst = arith.constant dense<0.000000e+00> : vector<16x8xf32>
      %23 = tpu.matmul %17, %22, %cst {dimension_numbers = #tpu.dot_dimension_numbers<[1], [1], [0], [0], [0, 0, 1, 0], [], []>} : vector<16x128xf32>, vector<8x128xf32>, vector<16x8xf32> -> vector<16x8xf32>
      %c0_10 = arith.constant 0 : index
      %c0_11 = arith.constant 0 : index
      %c0_12 = arith.constant 0 : index
      %24 = vector.load %arg4[%c0_10, %c0_11, %c0_12] : memref<2x1x8xf32, #tpu.memory_space<vmem>>, vector<1x1x8xf32>
      %25 = vector.shape_cast %24 : vector<1x1x8xf32> to vector<1x8xf32>
      %26 = vector.broadcast %25 : vector<1x8xf32> to vector<16x8xf32>
      %27 = arith.addf %23, %26 : vector<16x8xf32>
      %cst_13 = arith.constant 0.000000e+00 : f32
      %28 = vector.broadcast %cst_13 : f32 to vector<16x1xf32>
      %29 = arith.cmpf ogt, %7, %28 : vector<16x1xf32>
      %cst_14 = arith.constant -1.000000e+30 : f32
      %30 = vector.shape_cast %29 : vector<16x1xi1> to vector<16x1xi1>
      %31 = vector.broadcast %30 : vector<16x1xi1> to vector<16x8xi1>
      %32 = vector.broadcast %cst_14 : f32 to vector<16x8xf32>
      %33 = arith.select %31, %27, %32 : vector<16x8xi1>, vector<16x8xf32>
      %cst_15 = arith.constant dense<0xFF800000> : vector<8xf32>
      %34 = vector.multi_reduction <maximumf>, %33, %cst_15 [0] : vector<16x8xf32> to vector<8xf32>
      %35 = vector.shape_cast %34 : vector<8xf32> to vector<1x8xf32>
      %c0_16 = arith.constant 0 : index
      %c0_17 = arith.constant 0 : index
      %c0_18 = arith.constant 0 : index
      %36 = vector.load %arg10[%c0_16, %c0_17, %c0_18] : memref<2x1x8xf32, #tpu.memory_space<vmem>>, vector<1x1x8xf32>
      %37 = vector.shape_cast %36 : vector<1x1x8xf32> to vector<1x8xf32>
      %38 = arith.maximumf %37, %35 : vector<1x8xf32>
      %39 = vector.broadcast %38 : vector<1x8xf32> to vector<16x8xf32>
      %40 = arith.subf %33, %39 : vector<16x8xf32>
      %41 = math.exp %40 : vector<16x8xf32>
      %42 = vector.broadcast %7 : vector<16x1xf32> to vector<16x8xf32>
      %43 = arith.mulf %41, %42 : vector<16x8xf32>
      %c0_19 = arith.constant 0 : index
      %c0_20 = arith.constant 0 : index
      %c0_21 = arith.constant 0 : index
      %44 = vector.load %arg11[%c0_19, %c0_20, %c0_21] : memref<2x1x8xf32, #tpu.memory_space<vmem>>, vector<1x1x8xf32>
      %45 = vector.shape_cast %44 : vector<1x1x8xf32> to vector<1x8xf32>
      %46 = arith.subf %37, %38 : vector<1x8xf32>
      %47 = math.exp %46 : vector<1x8xf32>
      %48 = arith.mulf %45, %47 : vector<1x8xf32>
      %cst_22 = arith.constant dense<0.000000e+00> : vector<8xf32>
      %49 = vector.multi_reduction <add>, %43, %cst_22 [0] : vector<16x8xf32> to vector<8xf32>
      %50 = vector.shape_cast %49 : vector<8xf32> to vector<1x8xf32>
      %51 = arith.addf %48, %50 : vector<1x8xf32>
      %c0_23 = arith.constant 0 : index
      %c0_24 = arith.constant 0 : index
      %c0_25 = arith.constant 0 : index
      %52 = vector.load %arg11[%c0_23, %c0_24, %c0_25] : memref<2x1x8xf32, #tpu.memory_space<vmem>>, vector<1x1x8xf32>
      %53 = vector.shape_cast %52 : vector<1x1x8xf32> to vector<1x8xf32>
      %54 = vector.shape_cast %51 : vector<1x8xf32> to vector<1x1x8xf32>
      tpu.vector_store %arg11[%c0_23, %c0_24, %c0_25], %54 {strides = array<i32>} : memref<2x1x8xf32, #tpu.memory_space<vmem>>, vector<1x1x8xf32>,
      %c0_26 = arith.constant 0 : index
      %c0_27 = arith.constant 0 : index
      %c0_28 = arith.constant 0 : index
      %55 = vector.load %arg10[%c0_26, %c0_27, %c0_28] : memref<2x1x8xf32, #tpu.memory_space<vmem>>, vector<1x1x8xf32>
      %56 = vector.shape_cast %55 : vector<1x1x8xf32> to vector<1x8xf32>
      %57 = vector.shape_cast %38 : vector<1x8xf32> to vector<1x1x8xf32>
      tpu.vector_store %arg10[%c0_26, %c0_27, %c0_28], %57 {strides = array<i32>} : memref<2x1x8xf32, #tpu.memory_space<vmem>>, vector<1x1x8xf32>,
    } else {
    }
    %c1_i32 = arith.constant 1 : i32
    %11 = arith.cmpi eq, %arg0, %c1_i32 : i32
    %12 = arith.extui %11 : i1 to i32
    %c0_i32_2 = arith.constant 0 : i32
    %13 = arith.cmpi ne, %12, %c0_i32_2 : i32
    scf.if %13 {
      %c0 = arith.constant 0 : index
      %c0_4 = arith.constant 0 : index
      %17 = vector.load %arg2[%c0, %c0_4] : memref<16x128xf32, #tpu.memory_space<vmem>>, vector<16x128xf32>
      %c0_5 = arith.constant 0 : index
      %c0_6 = arith.constant 0 : index
      %c0_7 = arith.constant 0 : index
      %18 = vector.load %arg3[%c0_5, %c0_6, %c0_7] : memref<2x8x128xf32, #tpu.memory_space<vmem>>, vector<1x8x128xf32>
      %19 = vector.shape_cast %18 : vector<1x8x128xf32> to vector<8x128xf32>
      %cst = arith.constant dense<0.000000e+00> : vector<16x8xf32>
      %20 = tpu.matmul %17, %19, %cst {dimension_numbers = #tpu.dot_dimension_numbers<[1], [1], [0], [0], [0, 0, 1, 0], [], []>} : vector<16x128xf32>, vector<8x128xf32>, vector<16x8xf32> -> vector<16x8xf32>
      %c0_8 = arith.constant 0 : index
      %c0_9 = arith.constant 0 : index
      %c0_10 = arith.constant 0 : index
      %21 = vector.load %arg4[%c0_8, %c0_9, %c0_10] : memref<2x1x8xf32, #tpu.memory_space<vmem>>, vector<1x1x8xf32>
      %22 = vector.shape_cast %21 : vector<1x1x8xf32> to vector<1x8xf32>
      %23 = vector.broadcast %22 : vector<1x8xf32> to vector<16x8xf32>
      %24 = arith.addf %20, %23 : vector<16x8xf32>
      %cst_11 = arith.constant 0.000000e+00 : f32
      %25 = vector.broadcast %cst_11 : f32 to vector<16x1xf32>
      %26 = arith.cmpf ogt, %7, %25 : vector<16x1xf32>
      %cst_12 = arith.constant -1.000000e+30 : f32
      %27 = vector.shape_cast %26 : vector<16x1xi1> to vector<16x1xi1>
      %28 = vector.broadcast %27 : vector<16x1xi1> to vector<16x8xi1>
      %29 = vector.broadcast %cst_12 : f32 to vector<16x8xf32>
      %30 = arith.select %28, %24, %29 : vector<16x8xi1>, vector<16x8xf32>
      %c0_13 = arith.constant 0 : index
      %c0_14 = arith.constant 0 : index
      %c0_15 = arith.constant 0 : index
      %31 = vector.load %arg11[%c0_13, %c0_14, %c0_15] : memref<2x1x8xf32, #tpu.memory_space<vmem>>, vector<1x1x8xf32>
      %32 = vector.shape_cast %31 : vector<1x1x8xf32> to vector<1x8xf32>
      %cst_16 = arith.constant 0.000000e+00 : f32
      %33 = vector.broadcast %cst_16 : f32 to vector<1x8xf32>
      %34 = arith.cmpf ogt, %32, %33 : vector<1x8xf32>
      %c0_17 = arith.constant 0 : index
      %c0_18 = arith.constant 0 : index
      %c0_19 = arith.constant 0 : index
      %35 = vector.load %arg11[%c0_17, %c0_18, %c0_19] : memref<2x1x8xf32, #tpu.memory_space<vmem>>, vector<1x1x8xf32>
      %36 = vector.shape_cast %35 : vector<1x1x8xf32> to vector<1x8xf32>
      %cst_20 = arith.constant 1.000000e+00 : f32
      %37 = vector.broadcast %cst_20 : f32 to vector<1x8xf32>
      %38 = arith.divf %37, %36 : vector<1x8xf32>
      %cst_21 = arith.constant 0.000000e+00 : f32
      %39 = vector.broadcast %cst_21 : f32 to vector<1x8xf32>
      %40 = arith.select %34, %38, %39 : vector<1x8xi1>, vector<1x8xf32>
      %c0_22 = arith.constant 0 : index
      %c0_23 = arith.constant 0 : index
      %c0_24 = arith.constant 0 : index
      %41 = vector.load %arg10[%c0_22, %c0_23, %c0_24] : memref<2x1x8xf32, #tpu.memory_space<vmem>>, vector<1x1x8xf32>
      %42 = vector.shape_cast %41 : vector<1x1x8xf32> to vector<1x8xf32>
      %43 = vector.broadcast %42 : vector<1x8xf32> to vector<16x8xf32>
      %44 = arith.subf %30, %43 : vector<16x8xf32>
      %45 = math.exp %44 : vector<16x8xf32>
      %46 = vector.broadcast %7 : vector<16x1xf32> to vector<16x8xf32>
      %47 = arith.mulf %46, %45 : vector<16x8xf32>
      %48 = vector.broadcast %40 : vector<1x8xf32> to vector<16x8xf32>
      %49 = arith.mulf %47, %48 : vector<16x8xf32>
      %c0_25 = arith.constant 0 : index
      %c0_26 = arith.constant 0 : index
      %c0_27 = arith.constant 0 : index
      %50 = vector.load %arg5[%c0_25, %c0_26, %c0_27] : memref<2x8x128xf32, #tpu.memory_space<vmem>>, vector<1x8x128xf32>
      %51 = vector.shape_cast %50 : vector<1x8x128xf32> to vector<8x128xf32>
      %cst_28 = arith.constant dense<0.000000e+00> : vector<16x128xf32>
      %52 = tpu.matmul %49, %51, %cst_28 {dimension_numbers = #tpu.dot_dimension_numbers<[1], [0], [0], [1], [0, 0, 1, 1], [], []>} : vector<16x8xf32>, vector<8x128xf32>, vector<16x128xf32> -> vector<16x128xf32>
      %53 = arith.addf %17, %52 : vector<16x128xf32>
      %c0_i32_29 = arith.constant 0 : i32
      %54 = arith.cmpi eq, %arg1, %c0_i32_29 : i32
      %55 = arith.extui %54 : i1 to i32
      %c0_i32_30 = arith.constant 0 : i32
      %56 = arith.cmpi ne, %55, %c0_i32_30 : i32
      scf.if %56 {
        %cst_53 = arith.constant -1.000000e+30 : f32
        %94 = vector.broadcast %cst_53 : f32 to vector<1x8xf32>
        %c1_54 = arith.constant 1 : index
        %c0_55 = arith.constant 0 : index
        %c0_56 = arith.constant 0 : index
        %95 = vector.load %arg10[%c1_54, %c0_55, %c0_56] : memref<2x1x8xf32, #tpu.memory_space<vmem>>, vector<1x1x8xf32>
        %96 = vector.shape_cast %95 : vector<1x1x8xf32> to vector<1x8xf32>
        %97 = vector.shape_cast %94 : vector<1x8xf32> to vector<1x1x8xf32>
        tpu.vector_store %arg10[%c1_54, %c0_55, %c0_56], %97 {strides = array<i32>} : memref<2x1x8xf32, #tpu.memory_space<vmem>>, vector<1x1x8xf32>,
        %cst_57 = arith.constant 0.000000e+00 : f32
        %98 = vector.broadcast %cst_57 : f32 to vector<1x8xf32>
        %c1_58 = arith.constant 1 : index
        %c0_59 = arith.constant 0 : index
        %c0_60 = arith.constant 0 : index
        %99 = vector.load %arg11[%c1_58, %c0_59, %c0_60] : memref<2x1x8xf32, #tpu.memory_space<vmem>>, vector<1x1x8xf32>
        %100 = vector.shape_cast %99 : vector<1x1x8xf32> to vector<1x8xf32>
        %101 = vector.shape_cast %98 : vector<1x8xf32> to vector<1x1x8xf32>
        tpu.vector_store %arg11[%c1_58, %c0_59, %c0_60], %101 {strides = array<i32>} : memref<2x1x8xf32, #tpu.memory_space<vmem>>, vector<1x1x8xf32>,
      } else {
      }
      %c1 = arith.constant 1 : index
      %c0_31 = arith.constant 0 : index
      %c0_32 = arith.constant 0 : index
      %57 = vector.load %arg3[%c1, %c0_31, %c0_32] : memref<2x8x128xf32, #tpu.memory_space<vmem>>, vector<1x8x128xf32>
      %58 = vector.shape_cast %57 : vector<1x8x128xf32> to vector<8x128xf32>
      %cst_33 = arith.constant dense<0.000000e+00> : vector<16x8xf32>
      %59 = tpu.matmul %53, %58, %cst_33 {dimension_numbers = #tpu.dot_dimension_numbers<[1], [1], [0], [0], [0, 0, 1, 0], [], []>} : vector<16x128xf32>, vector<8x128xf32>, vector<16x8xf32> -> vector<16x8xf32>
      %c1_34 = arith.constant 1 : index
      %c0_35 = arith.constant 0 : index
      %c0_36 = arith.constant 0 : index
      %60 = vector.load %arg4[%c1_34, %c0_35, %c0_36] : memref<2x1x8xf32, #tpu.memory_space<vmem>>, vector<1x1x8xf32>
      %61 = vector.shape_cast %60 : vector<1x1x8xf32> to vector<1x8xf32>
      %62 = vector.broadcast %61 : vector<1x8xf32> to vector<16x8xf32>
      %63 = arith.addf %59, %62 : vector<16x8xf32>
      %cst_37 = arith.constant 0.000000e+00 : f32
      %64 = vector.broadcast %cst_37 : f32 to vector<16x1xf32>
      %65 = arith.cmpf ogt, %7, %64 : vector<16x1xf32>
      %cst_38 = arith.constant -1.000000e+30 : f32
      %66 = vector.shape_cast %65 : vector<16x1xi1> to vector<16x1xi1>
      %67 = vector.broadcast %66 : vector<16x1xi1> to vector<16x8xi1>
      %68 = vector.broadcast %cst_38 : f32 to vector<16x8xf32>
      %69 = arith.select %67, %63, %68 : vector<16x8xi1>, vector<16x8xf32>
      %cst_39 = arith.constant dense<0xFF800000> : vector<8xf32>
      %70 = vector.multi_reduction <maximumf>, %69, %cst_39 [0] : vector<16x8xf32> to vector<8xf32>
      %71 = vector.shape_cast %70 : vector<8xf32> to vector<1x8xf32>
      %c1_40 = arith.constant 1 : index
      %c0_41 = arith.constant 0 : index
      %c0_42 = arith.constant 0 : index
      %72 = vector.load %arg10[%c1_40, %c0_41, %c0_42] : memref<2x1x8xf32, #tpu.memory_space<vmem>>, vector<1x1x8xf32>
      %73 = vector.shape_cast %72 : vector<1x1x8xf32> to vector<1x8xf32>
      %74 = arith.maximumf %73, %71 : vector<1x8xf32>
      %75 = vector.broadcast %74 : vector<1x8xf32> to vector<16x8xf32>
      %76 = arith.subf %69, %75 : vector<16x8xf32>
      %77 = math.exp %76 : vector<16x8xf32>
      %78 = vector.broadcast %7 : vector<16x1xf32> to vector<16x8xf32>
      %79 = arith.mulf %77, %78 : vector<16x8xf32>
      %c1_43 = arith.constant 1 : index
      %c0_44 = arith.constant 0 : index
      %c0_45 = arith.constant 0 : index
      %80 = vector.load %arg11[%c1_43, %c0_44, %c0_45] : memref<2x1x8xf32, #tpu.memory_space<vmem>>, vector<1x1x8xf32>
      %81 = vector.shape_cast %80 : vector<1x1x8xf32> to vector<1x8xf32>
      %82 = arith.subf %73, %74 : vector<1x8xf32>
      %83 = math.exp %82 : vector<1x8xf32>
      %84 = arith.mulf %81, %83 : vector<1x8xf32>
      %cst_46 = arith.constant dense<0.000000e+00> : vector<8xf32>
      %85 = vector.multi_reduction <add>, %79, %cst_46 [0] : vector<16x8xf32> to vector<8xf32>
      %86 = vector.shape_cast %85 : vector<8xf32> to vector<1x8xf32>
      %87 = arith.addf %84, %86 : vector<1x8xf32>
      %c1_47 = arith.constant 1 : index
      %c0_48 = arith.constant 0 : index
      %c0_49 = arith.constant 0 : index
      %88 = vector.load %arg11[%c1_47, %c0_48, %c0_49] : memref<2x1x8xf32, #tpu.memory_space<vmem>>, vector<1x1x8xf32>
      %89 = vector.shape_cast %88 : vector<1x1x8xf32> to vector<1x8xf32>
      %90 = vector.shape_cast %87 : vector<1x8xf32> to vector<1x1x8xf32>
      tpu.vector_store %arg11[%c1_47, %c0_48, %c0_49], %90 {strides = array<i32>} : memref<2x1x8xf32, #tpu.memory_space<vmem>>, vector<1x1x8xf32>,
      %c1_50 = arith.constant 1 : index
      %c0_51 = arith.constant 0 : index
      %c0_52 = arith.constant 0 : index
      %91 = vector.load %arg10[%c1_50, %c0_51, %c0_52] : memref<2x1x8xf32, #tpu.memory_space<vmem>>, vector<1x1x8xf32>
      %92 = vector.shape_cast %91 : vector<1x1x8xf32> to vector<1x8xf32>
      %93 = vector.shape_cast %74 : vector<1x8xf32> to vector<1x1x8xf32>
      tpu.vector_store %arg10[%c1_50, %c0_51, %c0_52], %93 {strides = array<i32>} : memref<2x1x8xf32, #tpu.memory_space<vmem>>, vector<1x1x8xf32>,
    } else {
    }
    %c2_i32 = arith.constant 2 : i32
    %14 = arith.cmpi eq, %arg0, %c2_i32 : i32
    %15 = arith.extui %14 : i1 to i32
    %c0_i32_3 = arith.constant 0 : i32
    %16 = arith.cmpi ne, %15, %c0_i32_3 : i32
    scf.if %16 {
      %c0 = arith.constant 0 : index
      %c0_4 = arith.constant 0 : index
      %17 = vector.load %arg2[%c0, %c0_4] : memref<16x128xf32, #tpu.memory_space<vmem>>, vector<16x128xf32>
      %c0_5 = arith.constant 0 : index
      %c0_6 = arith.constant 0 : index
      %c0_7 = arith.constant 0 : index
      %18 = vector.load %arg3[%c0_5, %c0_6, %c0_7] : memref<2x8x128xf32, #tpu.memory_space<vmem>>, vector<1x8x128xf32>
      %19 = vector.shape_cast %18 : vector<1x8x128xf32> to vector<8x128xf32>
      %cst = arith.constant dense<0.000000e+00> : vector<16x8xf32>
      %20 = tpu.matmul %17, %19, %cst {dimension_numbers = #tpu.dot_dimension_numbers<[1], [1], [0], [0], [0, 0, 1, 0], [], []>} : vector<16x128xf32>, vector<8x128xf32>, vector<16x8xf32> -> vector<16x8xf32>
      %c0_8 = arith.constant 0 : index
      %c0_9 = arith.constant 0 : index
      %c0_10 = arith.constant 0 : index
      %21 = vector.load %arg4[%c0_8, %c0_9, %c0_10] : memref<2x1x8xf32, #tpu.memory_space<vmem>>, vector<1x1x8xf32>
      %22 = vector.shape_cast %21 : vector<1x1x8xf32> to vector<1x8xf32>
      %23 = vector.broadcast %22 : vector<1x8xf32> to vector<16x8xf32>
      %24 = arith.addf %20, %23 : vector<16x8xf32>
      %cst_11 = arith.constant 0.000000e+00 : f32
      %25 = vector.broadcast %cst_11 : f32 to vector<16x1xf32>
      %26 = arith.cmpf ogt, %7, %25 : vector<16x1xf32>
      %cst_12 = arith.constant -1.000000e+30 : f32
      %27 = vector.shape_cast %26 : vector<16x1xi1> to vector<16x1xi1>
      %28 = vector.broadcast %27 : vector<16x1xi1> to vector<16x8xi1>
      %29 = vector.broadcast %cst_12 : f32 to vector<16x8xf32>
      %30 = arith.select %28, %24, %29 : vector<16x8xi1>, vector<16x8xf32>
      %c0_13 = arith.constant 0 : index
      %c0_14 = arith.constant 0 : index
      %c0_15 = arith.constant 0 : index
      %31 = vector.load %arg11[%c0_13, %c0_14, %c0_15] : memref<2x1x8xf32, #tpu.memory_space<vmem>>, vector<1x1x8xf32>
      %32 = vector.shape_cast %31 : vector<1x1x8xf32> to vector<1x8xf32>
      %cst_16 = arith.constant 0.000000e+00 : f32
      %33 = vector.broadcast %cst_16 : f32 to vector<1x8xf32>
      %34 = arith.cmpf ogt, %32, %33 : vector<1x8xf32>
      %c0_17 = arith.constant 0 : index
      %c0_18 = arith.constant 0 : index
      %c0_19 = arith.constant 0 : index
      %35 = vector.load %arg11[%c0_17, %c0_18, %c0_19] : memref<2x1x8xf32, #tpu.memory_space<vmem>>, vector<1x1x8xf32>
      %36 = vector.shape_cast %35 : vector<1x1x8xf32> to vector<1x8xf32>
      %cst_20 = arith.constant 1.000000e+00 : f32
      %37 = vector.broadcast %cst_20 : f32 to vector<1x8xf32>
      %38 = arith.divf %37, %36 : vector<1x8xf32>
      %cst_21 = arith.constant 0.000000e+00 : f32
      %39 = vector.broadcast %cst_21 : f32 to vector<1x8xf32>
      %40 = arith.select %34, %38, %39 : vector<1x8xi1>, vector<1x8xf32>
      %c0_22 = arith.constant 0 : index
      %c0_23 = arith.constant 0 : index
      %c0_24 = arith.constant 0 : index
      %41 = vector.load %arg10[%c0_22, %c0_23, %c0_24] : memref<2x1x8xf32, #tpu.memory_space<vmem>>, vector<1x1x8xf32>
      %42 = vector.shape_cast %41 : vector<1x1x8xf32> to vector<1x8xf32>
      %43 = vector.broadcast %42 : vector<1x8xf32> to vector<16x8xf32>
      %44 = arith.subf %30, %43 : vector<16x8xf32>
      %45 = math.exp %44 : vector<16x8xf32>
      %46 = vector.broadcast %7 : vector<16x1xf32> to vector<16x8xf32>
      %47 = arith.mulf %46, %45 : vector<16x8xf32>
      %48 = vector.broadcast %40 : vector<1x8xf32> to vector<16x8xf32>
      %49 = arith.mulf %47, %48 : vector<16x8xf32>
      %c0_25 = arith.constant 0 : index
      %c0_26 = arith.constant 0 : index
      %c0_27 = arith.constant 0 : index
      %50 = vector.load %arg5[%c0_25, %c0_26, %c0_27] : memref<2x8x128xf32, #tpu.memory_space<vmem>>, vector<1x8x128xf32>
      %51 = vector.shape_cast %50 : vector<1x8x128xf32> to vector<8x128xf32>
      %cst_28 = arith.constant dense<0.000000e+00> : vector<16x128xf32>
      %52 = tpu.matmul %49, %51, %cst_28 {dimension_numbers = #tpu.dot_dimension_numbers<[1], [0], [0], [1], [0, 0, 1, 1], [], []>} : vector<16x8xf32>, vector<8x128xf32>, vector<16x128xf32> -> vector<16x128xf32>
      %53 = arith.addf %17, %52 : vector<16x128xf32>
      %c1 = arith.constant 1 : index
      %c0_29 = arith.constant 0 : index
      %c0_30 = arith.constant 0 : index
      %54 = vector.load %arg3[%c1, %c0_29, %c0_30] : memref<2x8x128xf32, #tpu.memory_space<vmem>>, vector<1x8x128xf32>
      %55 = vector.shape_cast %54 : vector<1x8x128xf32> to vector<8x128xf32>
      %cst_31 = arith.constant dense<0.000000e+00> : vector<16x8xf32>
      %56 = tpu.matmul %53, %55, %cst_31 {dimension_numbers = #tpu.dot_dimension_numbers<[1], [1], [0], [0], [0, 0, 1, 0], [], []>} : vector<16x128xf32>, vector<8x128xf32>, vector<16x8xf32> -> vector<16x8xf32>
      %c1_32 = arith.constant 1 : index
      %c0_33 = arith.constant 0 : index
      %c0_34 = arith.constant 0 : index
      %57 = vector.load %arg4[%c1_32, %c0_33, %c0_34] : memref<2x1x8xf32, #tpu.memory_space<vmem>>, vector<1x1x8xf32>
      %58 = vector.shape_cast %57 : vector<1x1x8xf32> to vector<1x8xf32>
      %59 = vector.broadcast %58 : vector<1x8xf32> to vector<16x8xf32>
      %60 = arith.addf %56, %59 : vector<16x8xf32>
      %cst_35 = arith.constant 0.000000e+00 : f32
      %61 = vector.broadcast %cst_35 : f32 to vector<16x1xf32>
      %62 = arith.cmpf ogt, %7, %61 : vector<16x1xf32>
      %cst_36 = arith.constant -1.000000e+30 : f32
      %63 = vector.shape_cast %62 : vector<16x1xi1> to vector<16x1xi1>
      %64 = vector.broadcast %63 : vector<16x1xi1> to vector<16x8xi1>
      %65 = vector.broadcast %cst_36 : f32 to vector<16x8xf32>
      %66 = arith.select %64, %60, %65 : vector<16x8xi1>, vector<16x8xf32>
      %c1_37 = arith.constant 1 : index
      %c0_38 = arith.constant 0 : index
      %c0_39 = arith.constant 0 : index
      %67 = vector.load %arg11[%c1_37, %c0_38, %c0_39] : memref<2x1x8xf32, #tpu.memory_space<vmem>>, vector<1x1x8xf32>
      %68 = vector.shape_cast %67 : vector<1x1x8xf32> to vector<1x8xf32>
      %cst_40 = arith.constant 0.000000e+00 : f32
      %69 = vector.broadcast %cst_40 : f32 to vector<1x8xf32>
      %70 = arith.cmpf ogt, %68, %69 : vector<1x8xf32>
      %c1_41 = arith.constant 1 : index
      %c0_42 = arith.constant 0 : index
      %c0_43 = arith.constant 0 : index
      %71 = vector.load %arg11[%c1_41, %c0_42, %c0_43] : memref<2x1x8xf32, #tpu.memory_space<vmem>>, vector<1x1x8xf32>
      %72 = vector.shape_cast %71 : vector<1x1x8xf32> to vector<1x8xf32>
      %cst_44 = arith.constant 1.000000e+00 : f32
      %73 = vector.broadcast %cst_44 : f32 to vector<1x8xf32>
      %74 = arith.divf %73, %72 : vector<1x8xf32>
      %cst_45 = arith.constant 0.000000e+00 : f32
      %75 = vector.broadcast %cst_45 : f32 to vector<1x8xf32>
      %76 = arith.select %70, %74, %75 : vector<1x8xi1>, vector<1x8xf32>
      %c1_46 = arith.constant 1 : index
      %c0_47 = arith.constant 0 : index
      %c0_48 = arith.constant 0 : index
      %77 = vector.load %arg10[%c1_46, %c0_47, %c0_48] : memref<2x1x8xf32, #tpu.memory_space<vmem>>, vector<1x1x8xf32>
      %78 = vector.shape_cast %77 : vector<1x1x8xf32> to vector<1x8xf32>
      %79 = vector.broadcast %78 : vector<1x8xf32> to vector<16x8xf32>
      %80 = arith.subf %66, %79 : vector<16x8xf32>
      %81 = math.exp %80 : vector<16x8xf32>
      %82 = vector.broadcast %7 : vector<16x1xf32> to vector<16x8xf32>
      %83 = arith.mulf %82, %81 : vector<16x8xf32>
      %84 = vector.broadcast %76 : vector<1x8xf32> to vector<16x8xf32>
      %85 = arith.mulf %83, %84 : vector<16x8xf32>
      %c1_49 = arith.constant 1 : index
      %c0_50 = arith.constant 0 : index
      %c0_51 = arith.constant 0 : index
      %86 = vector.load %arg5[%c1_49, %c0_50, %c0_51] : memref<2x8x128xf32, #tpu.memory_space<vmem>>, vector<1x8x128xf32>
      %87 = vector.shape_cast %86 : vector<1x8x128xf32> to vector<8x128xf32>
      %cst_52 = arith.constant dense<0.000000e+00> : vector<16x128xf32>
      %88 = tpu.matmul %85, %87, %cst_52 {dimension_numbers = #tpu.dot_dimension_numbers<[1], [0], [0], [1], [0, 0, 1, 1], [], []>} : vector<16x8xf32>, vector<8x128xf32>, vector<16x128xf32> -> vector<16x128xf32>
      %89 = arith.addf %53, %88 : vector<16x128xf32>
      %c0_i32_53 = arith.constant 0 : i32
      %90 = arith.cmpi eq, %arg1, %c0_i32_53 : i32
      %91 = arith.extui %90 : i1 to i32
      %c0_i32_54 = arith.constant 0 : i32
      %92 = arith.cmpi ne, %91, %c0_i32_54 : i32
      scf.if %92 {
        %cst_73 = arith.constant 0.000000e+00 : f32
        %115 = vector.broadcast %cst_73 : f32 to vector<1x64xf32>
        %c0_74 = arith.constant 0 : index
        %c0_75 = arith.constant 0 : index
        %116 = vector.load %arg12[%c0_74, %c0_75] : memref<1x64xf32, #tpu.memory_space<vmem>>, vector<1x64xf32>
        tpu.vector_store %arg12[%c0_74, %c0_75], %115 {strides = array<i32>} : memref<1x64xf32, #tpu.memory_space<vmem>>, vector<1x64xf32>,
      } else {
      }
      %c0_55 = arith.constant 0 : index
      %c0_56 = arith.constant 0 : index
      %93 = vector.load %arg6[%c0_55, %c0_56] : memref<128x64xf32, #tpu.memory_space<vmem>>, vector<128x64xf32>
      %cst_57 = arith.constant dense<0.000000e+00> : vector<16x64xf32>
      %94 = tpu.matmul %89, %93, %cst_57 {dimension_numbers = #tpu.dot_dimension_numbers<[1], [0], [0], [1], [0, 0, 1, 1], [], []>} : vector<16x128xf32>, vector<128x64xf32>, vector<16x64xf32> -> vector<16x64xf32>
      %c0_58 = arith.constant 0 : index
      %c0_59 = arith.constant 0 : index
      %95 = vector.load %arg7[%c0_58, %c0_59] : memref<1x64xf32, #tpu.memory_space<vmem>>, vector<1x64xf32>
      %96 = vector.broadcast %95 : vector<1x64xf32> to vector<16x64xf32>
      %97 = arith.addf %94, %96 : vector<16x64xf32>
      %98 = arith.negf %97 : vector<16x64xf32>
      %99 = math.exp %98 : vector<16x64xf32>
      %cst_60 = arith.constant 1.000000e+00 : f32
      %100 = vector.broadcast %cst_60 : f32 to vector<16x64xf32>
      %101 = arith.addf %100, %99 : vector<16x64xf32>
      %102 = arith.divf %100, %101 : vector<16x64xf32>
      %103 = arith.mulf %97, %102 : vector<16x64xf32>
      %c0_61 = arith.constant 0 : index
      %c0_62 = arith.constant 0 : index
      %104 = vector.load %arg12[%c0_61, %c0_62] : memref<1x64xf32, #tpu.memory_space<vmem>>, vector<1x64xf32>
      %105 = vector.broadcast %7 : vector<16x1xf32> to vector<16x64xf32>
      %106 = arith.mulf %103, %105 : vector<16x64xf32>
      %cst_63 = arith.constant dense<0.000000e+00> : vector<64xf32>
      %107 = vector.multi_reduction <add>, %106, %cst_63 [0] : vector<16x64xf32> to vector<64xf32>
      %108 = vector.shape_cast %107 : vector<64xf32> to vector<1x64xf32>
      %109 = arith.addf %104, %108 : vector<1x64xf32>
      %c0_64 = arith.constant 0 : index
      %c0_65 = arith.constant 0 : index
      %110 = vector.load %arg12[%c0_64, %c0_65] : memref<1x64xf32, #tpu.memory_space<vmem>>, vector<1x64xf32>
      tpu.vector_store %arg12[%c0_64, %c0_65], %109 {strides = array<i32>} : memref<1x64xf32, #tpu.memory_space<vmem>>, vector<1x64xf32>,
      %c0_66 = arith.constant 0 : index
      %c0_67 = arith.constant 0 : index
      %111 = vector.load %arg12[%c0_66, %c0_67] : memref<1x64xf32, #tpu.memory_space<vmem>>, vector<1x64xf32>
      %c0_68 = arith.constant 0 : index
      %c0_69 = arith.constant 0 : index
      %112 = vector.load %arg8[%c0_68, %c0_69] : memref<64x1xf32, #tpu.memory_space<vmem>>, vector<64x1xf32>
      %cst_70 = arith.constant dense<0.000000e+00> : vector<1x1xf32>
      %113 = tpu.matmul %111, %112, %cst_70 {dimension_numbers = #tpu.dot_dimension_numbers<[1], [0], [0], [1], [0, 0, 1, 1], [], []>} : vector<1x64xf32>, vector<64x1xf32>, vector<1x1xf32> -> vector<1x1xf32>
      %c0_71 = arith.constant 0 : index
      %c0_72 = arith.constant 0 : index
      %114 = vector.load %arg9[%c0_71, %c0_72] : memref<1x1xf32, #tpu.memory_space<vmem>>, vector<1x1xf32>
      tpu.vector_store %arg9[%c0_71, %c0_72], %113 {strides = array<i32>} : memref<1x1xf32, #tpu.memory_space<vmem>>, vector<1x1xf32>,
    } else {
    }
    return
  }
  func.func @transform_0(%arg0: i32, %arg1: i32) -> (i32, i32) {
    %c0_i32 = arith.constant 0 : i32
    %c0_i32_0 = arith.constant 0 : i32
    return %arg1, %c0_i32 : i32, i32
  }
  func.func @transform_1(%arg0: i32, %arg1: i32) -> (i32, i32, i32) {
    %c0_i32 = arith.constant 0 : i32
    %c0_i32_0 = arith.constant 0 : i32
    %c0_i32_1 = arith.constant 0 : i32
    %c0_i32_2 = arith.constant 0 : i32
    return %c0_i32, %c0_i32_0, %c0_i32_1 : i32, i32, i32
  }
  func.func @transform_2(%arg0: i32, %arg1: i32) -> (i32, i32, i32) {
    %c0_i32 = arith.constant 0 : i32
    %c0_i32_0 = arith.constant 0 : i32
    %c0_i32_1 = arith.constant 0 : i32
    %c0_i32_2 = arith.constant 0 : i32
    return %c0_i32, %c0_i32_0, %c0_i32_1 : i32, i32, i32
  }
  func.func @transform_3(%arg0: i32, %arg1: i32) -> (i32, i32, i32) {
    %c0_i32 = arith.constant 0 : i32
    %c0_i32_0 = arith.constant 0 : i32
    %c0_i32_1 = arith.constant 0 : i32
    %c0_i32_2 = arith.constant 0 : i32
    return %c0_i32, %c0_i32_0, %c0_i32_1 : i32, i32, i32
  }
  func.func @transform_4(%arg0: i32, %arg1: i32) -> (i32, i32) {
    %c0_i32 = arith.constant 0 : i32
    %c0_i32_0 = arith.constant 0 : i32
    %c0_i32_1 = arith.constant 0 : i32
    return %c0_i32, %c0_i32_0 : i32, i32
  }
  func.func @transform_5(%arg0: i32, %arg1: i32) -> (i32, i32) {
    %c0_i32 = arith.constant 0 : i32
    %c0_i32_0 = arith.constant 0 : i32
    %c0_i32_1 = arith.constant 0 : i32
    return %c0_i32, %c0_i32_0 : i32, i32
  }
  func.func @transform_6(%arg0: i32, %arg1: i32) -> (i32, i32) {
    %c0_i32 = arith.constant 0 : i32
    %c0_i32_0 = arith.constant 0 : i32
    %c0_i32_1 = arith.constant 0 : i32
    return %c0_i32, %c0_i32_0 : i32, i32
  }
  func.func @transform_7(%arg0: i32, %arg1: i32) -> (i32, i32) {
    %c0_i32 = arith.constant 0 : i32
    %c0_i32_0 = arith.constant 0 : i32
    %c0_i32_1 = arith.constant 0 : i32
    return %c0_i32, %c0_i32_0 : i32, i32
  }
}

</mosaic_0001>

<bundles_post_ra>
// kernel: jit_painn_ele_forward.1
= control target key start
LH: loop header
LB: loop body
LE: loop exit
PB: predicated region body
PF: predicated region fallthrough
CT: control target
= control target key end

     0   :  { %12 = vsyncpa [#allocation6], 0  ;;  %s1832_s24 = smov 0   ;;  %s1834_s25 = smov 0   ;;  %s2053_s0 = inlined_call_operand.vmem [shape: f32[16,128], index: 0, kind: input, shape index: {}]   ;;  %s2054_s1 = inlined_call_operand.vmem [shape: f32[2,8,128], index: 1, kind: input, shape index: {}]   ;;  %s2055_s2 = inlined_call_operand.vmem [shape: f32[2,1,8], index: 2, kind: input, shape index: {}]   ;;  %s2056_s3 = inlined_call_operand.vmem [shape: f32[2,8,128], index: 3, kind: input, shape index: {}]   ;;  %s2057_s4 = inlined_call_operand.vmem [shape: f32[128,64], index: 4, kind: input, shape index: {}]   ;;  %s2058_s5 = inlined_call_operand.vmem [shape: f32[1,64], index: 5, kind: input, shape index: {}]   ;;  %s2059_s6 = inlined_call_operand.vmem [shape: f32[64,1], index: 6, kind: input, shape index: {}]   ;;  %s2060_s7 = inlined_call_operand.hbm [shape: f32[1,1], index: 7, kind: output, shape index: {}]  }
   0x1   :  { %s1836_s26 = smov 0  }
   0x2 LB: > { %s1479_s27 = sadd.s32 4294967295, %s1783_s26   ;;  %s30_s28 = sadd.s32 1, %s1779_s25  ;;  %s1783_s26 = sphi %s1836_s26, %s18_s26   ;;  %s1779_s25 = sphi %s1834_s25, %s2063_s25   ;;  %s1775_s24 = sphi %s1832_s24, %s2062_s24  }
   0x3   : > { %p32_p0 = scmp.ge.s32.totalorder %s30_s28, 3  ;;  %p1482_p1 = scmp.ge.s32.totalorder %s1783_s26, 1 }
   0x4   : > { %p246_p2 = scmp.lt.s32.totalorder %s1783_s26, 4 }
   0x5   : > { %s2065_s28 = smov (%p32_p0, %s30_s28), 0 }
   0x6   : > { %p247_p3 = pnand %p1482_p1, %p246_p2 }
   0x7   : > { %p1483_p4 = scmp.ne.s32.totalorder (!%p247_p3), %s1775_s24, 0 }
   0x8   : > { %250 = sbr.rel (%p247_p3) target bundleno = 2267 (0x8db), region = 48 }
   0xd   : > { %295 = sbr.rel (%p1483_p4) target bundleno = 276 (0x114), region = 52 }
  0x12   : > { %v305_v0 = vld [vmem:[%s2054_s1] sm:$0xff]  ;;  %v297_v2 = vld [vmem:[%s2053_s0 + $0x8] sm:$0xff]  ;;  %vm302_vm0 = vcmask 57344   ;;  %v1785_v3 = vmov -1e+30   ;;  %v1786_v4 = vmov 0.0   ;;  %v409_v15 = vlaneseq }
  0x13   : > { %v296_v1 = vld [vmem:[%s2053_s0] sm:$0xff]  ;;  %1564 = vmatprep.subr.mxu0 %v305_v0  ;;  %303 = vst.msk [vmem:[#allocation2] sm:$0x1] %vm302_vm0, %v1785_v3  ;;  %304 = vst.msk [vmem:[#allocation3] sm:$0x1] %vm302_vm0, %v1786_v4  ;;  %vm396_vm1 = vcmask 64512  }
  0x14   : > { %1566 = vmatprep.mubr.f32.mxu0 %v296_v1  ;;  %1565 = vmatpush3.xpose.msra.mxu0 %v305_v0  ;;  %v1484_v5 = vld [vmem:[%s2055_s2] ss:$0 sm:$0xff]  ;;  %v410_v18 = vshrl.u32 %v409_v15, 7 }
  0x16   : > { %v411_v22 = vsub.s32 0, %v410_v18 }
  0x17   : > { %1567 = vmatmul.mubr.f32.vlgmr.msra.gmra.mxu0 %v297_v2 }
  0x1a   : > { %v406_v20 = vld [vmem:[#allocation2] sm:$0x1]  ;;  %v422_v41 = vld [vmem:[#allocation3] sm:$0x1] }
  0xd7   : > { %v1568_v6 = vpop.f32.mrf.mxu0 }
  0xd8   : > { %v385_v7 = vadd.f32 %v1568_v6, %v1484_v5 }
  0xd9   : > { %v379_v8 = vpop.f32.mrf.mxu0 }
  0xda   : > { %v380_v9 = vadd.f32 %v1484_v5, %v379_v8  ;;  %v398_v10 = vsel %vm396_vm1, %v385_v7, -inf }
  0xdc   : > { %v397_v11 = vsel %vm396_vm1, %v380_v9, -inf }
  0xdd   : > { %v399_v12 = vmax.f32 %v397_v11, %v398_v10 }
  0xdf   : > { %v400_v13 = vrot.slane %v399_v12, 4 }
  0xe1   : > { %v401_v14 = vmax.f32 %v399_v12, %v400_v13 }
  0xe3   : > { %v402_v16 = vrot.slane %v401_v14, 2 }
  0xe5   : > { %v403_v17 = vmax.f32 %v401_v14, %v402_v16 }
  0xe7   : > { %v404_v19 = vrot.slane %v403_v17, 1 }
  0xe9   : > { %v405_v21 = vmax.f32 %v403_v17, %v404_v19 }
  0xeb   : > { %v407_v23 = vmax.f32 %v406_v20, %v405_v21 }
  0xed   : > { %v412_v24 = vrot.slane %v407_v23, %v411_v22  ;;  %439 = vst.msk [vmem:[#allocation2] sm:$0x1] %vm302_vm0, %v407_v23  ;;  %v423_v29 = vsub.f32 %v406_v20, %v407_v23 }
  0xef   : > { %v414_v25 = vsub.f32 %v380_v9, %v412_v24  ;;  %v415_v26 = vsub.f32 %v385_v7, %v412_v24  ;;  %v424_v30 = vmul.f32 1.442695, %v423_v29 }
  0xf1   : > { %v416_v27 = vmul.f32 1.442695, %v414_v25  ;;  %v418_v28 = vmul.f32 1.442695, %v415_v26 }
  0xf3   : > { %1695 = vpow2.f32 %v416_v27 }
  0xf4   : > { %1697 = vpow2.f32 %v418_v28 }
  0xf5   : > { %1699 = vpow2.f32 %v424_v30 }
 0x100   : > { %v1696_v31 = vpop.eup %1695 }
 0x101   : > { %v1698_v32 = vpop.eup %1697  ;;  %v427_v33 = vsel %vm396_vm1, %v1696_v31, 0.0 }
 0x102   : > { %v428_v34 = vsel %vm396_vm1, %v1698_v32, 0.0  ;;  %v1700_v40 = vpop.eup %1699 }
 0x103   : > { %v429_v35 = vadd.f32 %v428_v34, %v427_v33  ;;  %v426_v43 = vmul.f32 %v1700_v40, %v422_v41 }
 0x105   : > { %v430_v36 = vrot.slane %v429_v35, 4 }
 0x107   : > { %v431_v37 = vadd.f32 %v430_v36, %v429_v35 }
 0x109   : > { %v432_v38 = vrot.slane %v431_v37, 2 }
 0x10b   : > { %v433_v39 = vadd.f32 %v432_v38, %v431_v37 }
 0x10d   : > { %v434_v42 = vrot.slane %v433_v39, 1 }
 0x10f   : > { %v435_v44 = vadd.f32 %v434_v42, %v433_v39 }
 0x111   : > { %v436_v45 = vadd.f32 %v435_v44, %v426_v43 }
 0x113   : > { %438 = vst.msk [vmem:[#allocation3] sm:$0x1] %vm302_vm0, %v436_v45 }
 0x114 PF: > { %p1485_p5 = scmp.ne.s32.totalorder %s1775_s24, 1 }
 0x116   : > { %443 = sbr.rel (%p1485_p5) target bundleno = 957 (0x3bd), region = 60 }
 0x11b   : > { %v446_v46 = vld [vmem:[%s2054_s1] sm:$0xff]  ;;  %v445_v48 = vld [vmem:[%s2053_s0 + $0x8] sm:$0xff]  ;;  %v558_v61 = vlaneseq  ;;  %vm566_vm3 = vcmask 64512   ;;  %vm655_vm4 = vcmask 57344   ;;  %v1787_v12 = vmov -1e+30  }
 0x11c   : > { %v444_v47 = vld [vmem:[%s2053_s0] sm:$0xff]  ;;  %1569 = vmatprep.subr.mxu0 %v446_v46  ;;  %v1490_v7 = vld [vmem:[%s2054_s1 + $0x8] sm:$0xff]  ;;  %656 = vst.msk [vmem:[#allocation2 + $0x1] sm:$0x1] %vm655_vm4, %v1787_v12  ;;  %v1788_v13 = vmov 0.0  }
 0x11d   : > { %1571 = vmatprep.mubr.f32.mxu0 %v444_v47  ;;  %1570 = vmatpush3.xpose.msra.mxu0 %v446_v46  ;;  %v565_v49 = vld [vmem:[%s2056_s3] sm:$0xff]  ;;  %v559_v62 = vshrl.u32 %v558_v61, 7  ;;  %658 = vst.msk [vmem:[#allocation3 + $0x1] sm:$0x1] %vm655_vm4, %v1788_v13 }
 0x11e   : > { %1574 = vmatprep.subr.mxu1 %v565_v49  ;;  %v1486_v50 = vld [vmem:[%s2055_s2] ss:$0 sm:$0xff]  ;;  %v537_v51 = vld [vmem:[#allocation3] sm:$0x1]  ;;  %v1492_v14 = vld [vmem:[%s2055_s2 + $0x1] ss:$0 sm:$0xff] }
 0x11f   : > { %1575 = vmatpush3.msra.mxu1 %v565_v49  ;;  %v1487_v53 = vld [vmem:[#allocation2] ss:$0 sm:$0xff]  ;;  %1701 = vrcp.f32 %v537_v51  ;;  %vm538_vm2 = vcmp.gt.f32.partialorder %v537_v51, 0.0  ;;  %v560_v0 = vsub.s32 0, %v559_v62 }
 0x120   : > { %1572 = vmatmul.mubr.f32.vlgmr.msra.gmra.mxu0 %v445_v48  ;;  %1579 = vmatprep.subr.mxu1 %v1490_v7 }
 0x123   : > { %v756_v27 = vld [vmem:[#allocation2 + $0x1] sm:$0x1] }
 0x12c   : > { %v1702_v63 = vpop.eup %1701 }
 0x12d   : > { %v541_v1 = vsel %vm538_vm2, %v1702_v63, 0.0 }
 0x12e   : > { %v561_v2 = vrot.slane %v541_v1, %v560_v0 }
 0x1e0   : > { %v1573_v52 = vpop.f32.mrf.mxu0 }
 0x1e1   : > { %v526_v54 = vadd.f32 %v1573_v52, %v1486_v50 }
 0x1e2   : > { %v520_v55 = vpop.f32.mrf.mxu0 }
 0x1e3   : > { %v550_v56 = vsub.f32 %v526_v54, %v1487_v53  ;;  %v521_v57 = vadd.f32 %v1486_v50, %v520_v55 }
 0x1e5   : > { %v553_v58 = vmul.f32 1.442695, %v550_v56  ;;  %v549_v59 = vsub.f32 %v521_v57, %v1487_v53 }
 0x1e7   : > { %v551_v60 = vmul.f32 1.442695, %v549_v59  ;;  %1703 = vpow2.f32 %v553_v58 }
 0x1e9   : > { %1705 = vpow2.f32 %v551_v60 }
 0x1f4   : > { %v1704_v3 = vpop.eup %1703 }
 0x1f5   : > { %v564_v6 = vmul.f32 %v1704_v3, %v561_v2 }
 0x1f6   : > { %v1706_v4 = vpop.eup %1705 }
 0x1f7   : > { %v563_v5 = vmul.f32 %v1706_v4, %v561_v2 }
 0x1f9   : > { %1576 = vmatprep.mubr.msk.f32.mxu1 %vm566_vm3, %v563_v5 }
 0x1fa   : > { %1577 = vmatmul.mubr.msk.f32.vlgmr.msra.gmra.mxu1 %vm566_vm3, %v564_v6 }
 0x1fb   : > { %1580 = vmatpush3.xpose.msra.mxu1 %v1490_v7 }
 0x2ba   : > { %v1578_v8 = vpop.f32.mrf.mxu1 }
 0x2bb   : > { %v649_v11 = vadd.f32 %v1578_v8, %v445_v48 }
 0x2bc   : > { %v639_v9 = vpop.f32.mrf.mxu1 }
 0x2bd   : > { %v648_v10 = vadd.f32 %v639_v9, %v444_v47  ;;  %v773_v47 = vld [vmem:[#allocation3 + $0x1] sm:$0x1] }
 0x2bf   : > { %1581 = vmatprep.mubr.f32.mxu1 %v648_v10 }
 0x2c0   : > { %1582 = vmatmul.mubr.f32.vlgmr.msra.gmra.mxu1 %v649_v11 }
 0x380   : > { %v1583_v15 = vpop.f32.mrf.mxu1 }
 0x381   : > { %v741_v16 = vadd.f32 %v1583_v15, %v1492_v14 }
 0x382   : > { %v735_v17 = vpop.f32.mrf.mxu1 }
 0x383   : > { %v736_v18 = vadd.f32 %v1492_v14, %v735_v17  ;;  %v747_v19 = vsel %vm566_vm3, %v741_v16, -inf }
 0x385   : > { %v746_v20 = vsel %vm566_vm3, %v736_v18, -inf }
 0x386   : > { %v748_v21 = vmax.f32 %v746_v20, %v747_v19 }
 0x388   : > { %v749_v22 = vrot.slane %v748_v21, 4 }
 0x38a   : > { %v750_v23 = vmax.f32 %v748_v21, %v749_v22 }
 0x38c   : > { %v751_v24 = vrot.slane %v750_v23, 2 }
 0x38e   : > { %v752_v25 = vmax.f32 %v750_v23, %v751_v24 }
 0x390   : > { %v753_v26 = vrot.slane %v752_v25, 1 }
 0x392   : > { %v754_v28 = vmax.f32 %v752_v25, %v753_v26 }
 0x394   : > { %v757_v29 = vmax.f32 %v756_v27, %v754_v28 }
 0x396   : > { %v762_v30 = vrot.slane %v757_v29, %v560_v0  ;;  %790 = vst.msk [vmem:[#allocation2 + $0x1] sm:$0x1] %vm655_vm4, %v757_v29  ;;  %v774_v35 = vsub.f32 %v756_v27, %v757_v29 }
 0x398   : > { %v764_v31 = vsub.f32 %v736_v18, %v762_v30  ;;  %v765_v32 = vsub.f32 %v741_v16, %v762_v30  ;;  %v775_v36 = vmul.f32 1.442695, %v774_v35 }
 0x39a   : > { %v766_v33 = vmul.f32 1.442695, %v764_v31  ;;  %v768_v34 = vmul.f32 1.442695, %v765_v32 }
 0x39c   : > { %1707 = vpow2.f32 %v766_v33 }
 0x39d   : > { %1709 = vpow2.f32 %v768_v34 }
 0x39e   : > { %1711 = vpow2.f32 %v775_v36 }
 0x3a9   : > { %v1708_v37 = vpop.eup %1707 }
 0x3aa   : > { %v1710_v38 = vpop.eup %1709  ;;  %v778_v39 = vsel %vm566_vm3, %v1708_v37, 0.0 }
 0x3ab   : > { %v779_v40 = vsel %vm566_vm3, %v1710_v38, 0.0  ;;  %v1712_v46 = vpop.eup %1711 }
 0x3ac   : > { %v780_v41 = vadd.f32 %v779_v40, %v778_v39  ;;  %v777_v49 = vmul.f32 %v1712_v46, %v773_v47 }
 0x3ae   : > { %v781_v42 = vrot.slane %v780_v41, 4 }
 0x3b0   : > { %v782_v43 = vadd.f32 %v781_v42, %v780_v41 }
 0x3b2   : > { %v783_v44 = vrot.slane %v782_v43, 2 }
 0x3b4   : > { %v784_v45 = vadd.f32 %v783_v44, %v782_v43 }
 0x3b6   : > { %v785_v48 = vrot.slane %v784_v45, 1 }
 0x3b8   : > { %v786_v50 = vadd.f32 %v785_v48, %v784_v45 }
 0x3ba   : > { %v787_v51 = vadd.f32 %v786_v50, %v777_v49 }
 0x3bc   : > { %789 = vst.msk [vmem:[#allocation3 + $0x1] sm:$0x1] %vm655_vm4, %v787_v51 }
 0x3bd PF: > { %p1493_p6 = scmp.ne.s32.totalorder %s1775_s24, 2 }
 0x3bf   : > { %794 = sbr.rel (%p1493_p6) target bundleno = 2252 (0x8cc), region = 68 }
 0x3c4   : > { %v797_v52 = vld [vmem:[%s2054_s1] sm:$0xff]  ;;  %v796_v54 = vld [vmem:[%s2053_s0 + $0x8] sm:$0xff]  ;;  %v909_v3 = vlaneseq  ;;  %vm917_vm6 = vcmask 64512   ;;  %v1224_v19 = vld [vmem:[%s2057_s4 + $0x78] sm:$0xff]  ;;  %vm1207_vm8 = vcmask 516096   ;;  %vm1790_vm9 = vmmov 0  }
 0x3c5   : > { %v795_v53 = vld [vmem:[%s2053_s0] sm:$0xff]  ;;  %1584 = vmatprep.subr.mxu0 %v797_v52  ;;  %v1498_v13 = vld [vmem:[%s2054_s1 + $0x8] sm:$0xff]  ;;  %v1223_v20 = vld [vmem:[%s2057_s4 + $0x70] sm:$0xff]  ;;  %1604 = vmatprep.subr.mxu1 %v1224_v19  ;;  %vm1324_vm10 = vcmask 523264   ;;  %vm1419_vm11 = vcmask 0  }
 0x3c6   : > { %1586 = vmatprep.mubr.f32.mxu0 %v795_v53  ;;  %1585 = vmatpush3.xpose.msra.mxu0 %v797_v52  ;;  %v916_v55 = vld [vmem:[%s2056_s3] sm:$0xff]  ;;  %v1922_v4 = vshrl.u32 %v909_v3, 7  ;;  %v1502_v18 = vld [vmem:[%s2056_s3 + $0x8] sm:$0xff]  ;;  %v1220_v23 = vld [vmem:[%s2057_s4 + $0x58] sm:$0xff] }
 0x3c7   : > { %1589 = vmatprep.subr.mxu0 %v916_v55  ;;  %v1494_v56 = vld [vmem:[%s2055_s2] ss:$0 sm:$0xff]  ;;  %v888_v57 = vld [vmem:[#allocation3] sm:$0x1]  ;;  %1605 = vmatpush3.msra.mxu1 %v1224_v19  ;;  %v1222_v21 = vld [vmem:[%s2057_s4 + $0x68] sm:$0xff] }
 0x3c8   : > { %v1495_v59 = vld [vmem:[#allocation2] ss:$0 sm:$0xff]  ;;  %1713 = vrcp.f32 %v888_v57  ;;  %vm889_vm5 = vcmp.gt.f32.partialorder %v888_v57, 0.0  ;;  %v911_v6 = vsub.s32 0, %v1922_v4  ;;  %1606 = vmatprep.subr.mxu1 %v1223_v20  ;;  %v1219_v24 = vld [vmem:[%s2057_s4 + $0x50] sm:$0xff]  ;;  %v1218_v25 = vld [vmem:[%s2057_s4 + $0x48] sm:$0xff] }
 0x3c9   : > { %1587 = vmatmul.mubr.f32.vlgmr.msra.gmra.mxu0 %v796_v54  ;;  %1607 = vmatpush3.msra.mxu1 %v1223_v20  ;;  %v1221_v22 = vld [vmem:[%s2057_s4 + $0x60] sm:$0xff]  ;;  %v1216_v27 = vld [vmem:[%s2057_s4 + $0x38] sm:$0xff]  ;;  %v1215_v28 = vld [vmem:[%s2057_s4 + $0x30] sm:$0xff]  ;;  %v1789_v57 = vmov 0.0  }
 0x3ca   : > { %1590 = vmatpush3.msra.mxu0 %v916_v55  ;;  %1608 = vmatprep.subr.mxu1 %v1222_v21  ;;  %v1217_v26 = vld [vmem:[%s2057_s4 + $0x40] sm:$0xff]  ;;  %v1214_v29 = vld [vmem:[%s2057_s4 + $0x28] sm:$0xff]  ;;  %v1212_v31 = vld [vmem:[%s2057_s4 + $0x18] sm:$0xff]  ;;  %1208 = vst.msk [vmem:[#allocation4] sm:$0x1] %vm1207_vm8, %v1789_v57 }
 0x3cb   : > { %1594 = vmatprep.subr.mxu0 %v1498_v13  ;;  %1609 = vmatpush3.msra.mxu1 %v1222_v21  ;;  %v1213_v30 = vld [vmem:[%s2057_s4 + $0x20] sm:$0xff]  ;;  %v1211_v50 = vld [vmem:[%s2057_s4 + $0x10] sm:$0xff]  ;;  %v1210_v51 = vld [vmem:[%s2057_s4 + $0x8] sm:$0xff] }
 0x3cc   : > { %1610 = vmatprep.subr.mxu1 %v1221_v22  ;;  %v1500_v32 = vld [vmem:[%s2055_s2 + $0x1] ss:$0 sm:$0xff]  ;;  %v1089_v33 = vld [vmem:[#allocation3 + $0x1] sm:$0x1] }
 0x3cd   : > { %1611 = vmatpush3.msra.mxu1 %v1221_v22  ;;  %v1501_v35 = vld [vmem:[#allocation2 + $0x1] ss:$0 sm:$0xff]  ;;  %vm1090_vm7 = vcmp.gt.f32.partialorder %v1089_v33, 0.0 }
 0x3ce   : > { %1612 = vmatprep.subr.mxu1 %v1220_v23  ;;  %v1209_v52 = vld [vmem:[%s2057_s4] sm:$0xff] }
 0x3cf   : > { %1613 = vmatpush3.msra.mxu1 %v1220_v23 }
 0x3d0   : > { %1614 = vmatprep.subr.mxu1 %v1219_v24 }
 0x3d1   : > { %1615 = vmatpush3.msra.mxu1 %v1219_v24 }
 0x3d2   : > { %1616 = vmatprep.subr.mxu1 %v1218_v25 }
 0x3d3   : > { %1617 = vmatpush3.msra.mxu1 %v1218_v25  ;;  %v1321_v25 = vld [vmem:[#allocation4] sm:$0x1] }
 0x3d4   : > { %1618 = vmatprep.subr.mxu1 %v1217_v26 }
 0x3d5   : > { %v1714_v5 = vpop.eup %1713  ;;  %1619 = vmatpush3.msra.mxu1 %v1217_v26 }
 0x3d6   : > { %v892_v7 = vsel %vm889_vm5, %v1714_v5, 0.0  ;;  %1620 = vmatprep.subr.mxu1 %v1216_v27 }
 0x3d7   : > { %v912_v8 = vrot.slane %v892_v7, %v911_v6  ;;  %1621 = vmatpush3.msra.mxu1 %v1216_v27 }
 0x3d8   : > { %1622 = vmatprep.subr.mxu1 %v1215_v28 }
 0x3d9   : > { %1623 = vmatpush3.msra.mxu1 %v1215_v28 }
 0x3da   : > { %1624 = vmatprep.subr.mxu1 %v1214_v29 }
 0x3db   : > { %1625 = vmatpush3.msra.mxu1 %v1214_v29 }
 0x3dc   : > { %1626 = vmatprep.subr.mxu1 %v1213_v30 }
 0x3dd   : > { %1627 = vmatpush3.msra.mxu1 %v1213_v30 }
 0x3de   : > { %1628 = vmatprep.subr.mxu1 %v1212_v31 }
 0x3df   : > { %1629 = vmatpush3.msra.mxu1 %v1212_v31 }
 0x3e0   : > { %1630 = vmatprep.subr.mxu1 %v1211_v50 }
 0x3e1   : > { %1631 = vmatpush3.msra.mxu1 %v1211_v50 }
 0x3e2   : > { %1632 = vmatprep.subr.mxu1 %v1210_v51 }
 0x3e3   : > { %1633 = vmatpush3.msra.mxu1 %v1210_v51 }
 0x3e4   : > { %1634 = vmatprep.subr.mxu1 %v1209_v52 }
 0x3e5   : > { %1635 = vmatpush3.msra.mxu1 %v1209_v52 }
 0x489   : > { %v1588_v58 = vpop.f32.mrf.mxu0 }
 0x48a   : > { %v877_v60 = vadd.f32 %v1588_v58, %v1494_v56  ;;  %v1345_v58 = vld [vmem:[%s2059_s6 + $0x38] sm:$0xff] }
 0x48b   : > { %v871_v61 = vpop.f32.mrf.mxu0 }
 0x48c   : > { %v901_v62 = vsub.f32 %v877_v60, %v1495_v59  ;;  %v872_v63 = vadd.f32 %v1494_v56, %v871_v61  ;;  %v1343_v60 = vld [vmem:[%s2059_s6 + $0x28] sm:$0xff]  ;;  %v1342_v61 = vld [vmem:[%s2059_s6 + $0x20] sm:$0xff] }
 0x48e   : > { %v904_v0 = vmul.f32 1.442695, %v901_v62  ;;  %v900_v1 = vsub.f32 %v872_v63, %v1495_v59  ;;  %v1344_v59 = vld [vmem:[%s2059_s6 + $0x30] sm:$0xff]  ;;  %v1341_v62 = vld [vmem:[%s2059_s6 + $0x18] sm:$0xff] }
 0x48f   : > { %v1340_v63 = vld [vmem:[%s2059_s6 + $0x10] sm:$0xff] }
 0x490   : > { %v902_v2 = vmul.f32 1.442695, %v900_v1  ;;  %1715 = vpow2.f32 %v904_v0  ;;  %v1339_v0 = vld [vmem:[%s2059_s6 + $0x8] sm:$0xff]  ;;  %v1338_v1 = vld [vmem:[%s2059_s6] sm:$0xff] }
 0x492   : > { %1717 = vpow2.f32 %v902_v2  ;;  %v1505_v2 = vld [vmem:[%s2058_s5] ss:$0 sm:$0xff] }
 0x493   : > { %1719 = vrcp.f32 %v1089_v33 }
 0x49d   : > { %v1716_v9 = vpop.eup %1715 }
 0x49e   : > { %v915_v12 = vmul.f32 %v1716_v9, %v912_v8 }
 0x49f   : > { %v1718_v10 = vpop.eup %1717 }
 0x4a0   : > { %v914_v11 = vmul.f32 %v1718_v10, %v912_v8  ;;  %v1720_v43 = vpop.eup %1719 }
 0x4a1   : > { %v1093_v44 = vsel %vm1090_vm7, %v1720_v43, 0.0 }
 0x4a2   : > { %1591 = vmatprep.mubr.msk.f32.mxu0 %vm917_vm6, %v914_v11  ;;  %v1114_v45 = vrot.slane %v1093_v44, %v911_v6 }
 0x4a3   : > { %1592 = vmatmul.mubr.msk.f32.vlgmr.msra.gmra.mxu0 %vm917_vm6, %v915_v12 }
 0x4a4   : > { %1595 = vmatpush3.xpose.msra.mxu0 %v1498_v13 }
 0x4a5   : > { %1599 = vmatprep.subr.mxu0 %v1502_v18 }
 0x563   : > { %v1593_v14 = vpop.f32.mrf.mxu0 }
 0x564   : > { %v1934_v17 = vadd.f32 %v1593_v14, %v796_v54 }
 0x565   : > { %v990_v15 = vpop.f32.mrf.mxu0 }
 0x566   : > { %v1932_v16 = vadd.f32 %v990_v15, %v795_v53 }
 0x568   : > { %1596 = vmatprep.mubr.f32.mxu0 %v1932_v16 }
 0x569   : > { %1597 = vmatmul.mubr.f32.vlgmr.msra.gmra.mxu0 %v1934_v17 }
 0x56a   : > { %1600 = vmatpush3.msra.mxu0 %v1502_v18 }
 0x56b   : > { %1639 = vmatprep.subr.mxu0 %v1789_v57 }
 0x629   : > { %v1598_v34 = vpop.f32.mrf.mxu0 }
 0x62a   : > { %v1083_v36 = vadd.f32 %v1598_v34, %v1500_v32 }
 0x62b   : > { %v1077_v37 = vpop.f32.mrf.mxu0 }
 0x62c   : > { %v1103_v38 = vsub.f32 %v1083_v36, %v1501_v35  ;;  %v1078_v39 = vadd.f32 %v1500_v32, %v1077_v37 }
 0x62e   : > { %v1106_v40 = vmul.f32 1.442695, %v1103_v38  ;;  %v1102_v41 = vsub.f32 %v1078_v39, %v1501_v35 }
 0x630   : > { %v1104_v42 = vmul.f32 1.442695, %v1102_v41  ;;  %1721 = vpow2.f32 %v1106_v40 }
 0x632   : > { %1723 = vpow2.f32 %v1104_v42 }
 0x63d   : > { %v1722_v46 = vpop.eup %1721 }
 0x63e   : > { %v1117_v49 = vmul.f32 %v1722_v46, %v1114_v45 }
 0x63f   : > { %v1724_v47 = vpop.eup %1723 }
 0x640   : > { %v1116_v48 = vmul.f32 %v1724_v47, %v1114_v45 }
 0x642   : > { %1601 = vmatprep.mubr.msk.f32.mxu0 %vm917_vm6, %v1116_v48 }
 0x643   : > { %1602 = vmatmul.mubr.msk.f32.vlgmr.msra.gmra.mxu0 %vm917_vm6, %v1117_v49 }
 0x644   : > { %1640 = vmatpush3.msra.mxu0 %v1345_v58  ;;  %1655 = vmatprep.mubr.msk.f32.mxu0 %vm1790_vm9, %v1789_v57 }
 0x645   : > { %1641 = vmatprep.subr.mxu0 %v1789_v57 }
 0x646   : > { %1642 = vmatpush3.msra.mxu0 %v1344_v59 }
 0x647   : > { %1643 = vmatprep.subr.mxu0 %v1789_v57 }
 0x648   : > { %1644 = vmatpush3.msra.mxu0 %v1343_v60 }
 0x649   : > { %1645 = vmatprep.subr.mxu0 %v1789_v57 }
 0x64a   : > { %1646 = vmatpush3.msra.mxu0 %v1342_v61 }
 0x64b   : > { %1647 = vmatprep.subr.mxu0 %v1789_v57 }
 0x64c   : > { %1648 = vmatpush3.msra.mxu0 %v1341_v62 }
 0x64d   : > { %1649 = vmatprep.subr.mxu0 %v1789_v57 }
 0x64e   : > { %1650 = vmatpush3.msra.mxu0 %v1340_v63 }
 0x64f   : > { %1651 = vmatprep.subr.mxu0 %v1789_v57 }
 0x650   : > { %1652 = vmatpush3.msra.mxu0 %v1339_v0 }
 0x651   : > { %1653 = vmatprep.subr.mxu0 %v1789_v57 }
 0x652   : > { %1654 = vmatpush3.msra.mxu0 %v1338_v1 }
 0x703   : > { %v1603_v53 = vpop.f32.mrf.mxu0 }
 0x704   : > { %v1202_v56 = vadd.f32 %v1603_v53, %v1934_v17 }
 0x705   : > { %v1192_v54 = vpop.f32.mrf.mxu0 }
 0x706   : > { %v1201_v55 = vadd.f32 %v1192_v54, %v1932_v16 }
 0x708   : > { %1636 = vmatprep.mubr.f32.mxu1 %v1201_v55 }
 0x709   : > { %1637 = vmatmul.mubr.f32.vlgmr.msra.gmra.mxu1 %v1202_v56 }
 0x7c9   : > { %v1638_v3 = vpop.f32.mrf.mxu1 }
 0x7ca   : > { %v1304_v4 = vadd.f32 %v1638_v3, %v1505_v2 }
 0x7cb   : > { %v1298_v5 = vpop.f32.mrf.mxu1 }
 0x7cc   : > { %v1507_v6 = vmul.f32 -1.442695, %v1304_v4  ;;  %v1299_v7 = vadd.f32 %v1505_v2, %v1298_v5 }
 0x7ce   : > { %1725 = vpow2.f32 %v1507_v6  ;;  %v1506_v8 = vmul.f32 -1.442695, %v1299_v7 }
 0x7d0   : > { %1727 = vpow2.f32 %v1506_v8 }
 0x7db   : > { %v1726_v9 = vpop.eup %1725 }
 0x7dc   : > { %v1314_v10 = vadd.f32 1.0, %v1726_v9 }
 0x7dd   : > { %v1728_v11 = vpop.eup %1727 }
 0x7de   : > { %1729 = vrcp.f32 %v1314_v10  ;;  %v1313_v12 = vadd.f32 1.0, %v1728_v11 }
 0x7e0   : > { %1731 = vrcp.f32 %v1313_v12 }
 0x7eb   : > { %v1730_v13 = vpop.eup %1729 }
 0x7ec   : > { %v1320_v14 = vmul.f32 %v1730_v13, %v1304_v4 }
 0x7ed   : > { %v1732_v15 = vpop.eup %1731 }
 0x7ee   : > { %v1319_v16 = vmul.f32 %v1732_v15, %v1299_v7  ;;  %v1326_v17 = vsel %vm1324_vm10, %v1320_v14, 0.0 }
 0x7f0   : > { %v1325_v18 = vsel %vm1324_vm10, %v1319_v16, 0.0 }
 0x7f1   : > { %v1327_v19 = vadd.f32 %v1326_v17, %v1325_v18 }
 0x7f3   : > { %v1328_v20 = vrot.slane %v1327_v19, 4 }
 0x7f5   : > { %v1329_v21 = vadd.f32 %v1328_v20, %v1327_v19 }
 0x7f7   : > { %v1330_v22 = vrot.slane %v1329_v21, 2 }
 0x7f9   : > { %v1331_v23 = vadd.f32 %v1330_v22, %v1329_v21 }
 0x7fb   : > { %v1332_v24 = vrot.slane %v1331_v23, 1 }
 0x7fd   : > { %v1333_v26 = vadd.f32 %v1332_v24, %v1331_v23 }
 0x7ff   : > { %v1334_v27 = vadd.f32 %v1333_v26, %v1321_v25 }
 0x801   : > { %1336 = vst.msk [vmem:[#allocation4] sm:$0x1] %vm1207_vm8, %v1334_v27 }
 0x808   : > { %v1337_v28 = vld [vmem:[#allocation4] sm:$0x1] }
 0x809   : > { %1656 = vmatmul.mubr.msk.f32.vlgmr.msra.gmra.mxu0 %vm1324_vm10, %v1337_v28 }
 0x8c9   : > { %v1415_v29 = vpop.f32.mrf.mxu0 }
 0x8ca   : > { %1420 = vst.msk [vmem:[#allocation5] sm:$0x1] %vm1419_vm11, %v1415_v29 }
 0x8cb   : > { %v1657_v30 = vpop.f32.mrf.mxu0 }
 0x8cc PF: > { %p2029_p7 = scmp.eq.s32.totalorder %s1479_s27, 2  ;;  %s1791_s19 = smov [#allocation5]  }
 0x8cd   : > { %s1428_s20 = sshll.u32 %s1791_s19, 4  ;;  %s1429_s20 = int_to_ptr.vmem [resolvable:$true] %s1428_s20 }
 0x8ce   : > { %s1733_s21 = scalar_lea.vmem %s1429_s20, 16  ;;  %s1739_s22 = scalar_lea.vmem %s1429_s20, 32 }
 0x8cf   : > { %p1734_p8 = scmp.ne.s32.totalorder %s1429_s20, %s1733_s21  ;;  %p1740_p11 = scmp.lt.s32.totalorder %s1429_s20, %s1429_s20 }
 0x8d0   : > { %p1741_p12 = scmp.lt.s32.totalorder %s1739_s22, %s1733_s21 }
 0x8d1   : > { %p1735_p9 = pnand %p1734_p8, %p2029_p7 }
 0x8d2   : > { %p1742_p13 = por %p1741_p12, %p1740_p11 }
 0x8d3   : > { %p1736_p10 = pneg %p1735_p9 }
 0x8d5   : > { %p1743_p0 = pnand %p1742_p13, %p1736_p10 }
 0x8d7   : > { %1746 = shalt.err (!%p1743_p0)
}
 0x8d8   : > { %1659 = dma.vmem_to_hbm [thread:$0]  (%p2029_p7), %s1429_s20, 16, %s2060_s7, [#allocation6]  }
 0x8d9   : > { %1770 = dma.done.wait (%p2029_p7), [#allocation6], 16  }
 0x8da   : > { %1772 = vsyncadd (%p2029_p7), [#allocation6], 4294967280 }
 0x8db PF: > { %s18_s26 = sadd.s32 1, %s1783_s26   ;;  %s2062_s24 = smov %s1779_s25 }
 0x8dc   : > { %p15_p1 = scmp.ge.s32.totalorder %s18_s26, 5   ;;  %s2063_s25 = smov %s2065_s28 }
 0x8de   :  { %17 = sbr.rel (!%p15_p1) target bundleno = 2 (0x2), region = 110 }
 0x8e3   :  { %1441 = vsyncpa [#allocation6], 1 }
 0x8e4   :  { %1443 = vsyncpa [#allocation6 + $0x1], 1 }

</bundles_post_ra>
